<compile_context>
chip_gen: v6e
topology: v6e:2x2x1
jax: 0.10.0
libtpu: 0.0.40
codegen_flags: <defaults>
</compile_context>

<pallas_src>
from functools import partial

import jax
import jax.numpy as jnp
from jax.experimental import pallas as pl
from jax.experimental.pallas import tpu as pltpu


# --------------------------------------------------------------------------
# In-kernel math
# --------------------------------------------------------------------------
def _layernorm_f32(x, g, b, eps):
    x = x.astype(jnp.float32)
    mean = jnp.mean(x, axis=-1, keepdims=True)
    xc = x - mean
    var = jnp.mean(xc * xc, axis=-1, keepdims=True)      # biased, like torch
    inv = jax.lax.rsqrt(var + eps)                        # EUP slot
    return xc * inv * g.astype(jnp.float32) + b.astype(jnp.float32)


_EPILOGUES = {
    None: lambda z: z,
    "gelu": jax.nn.gelu,
    "relu": lambda z: jnp.maximum(z, 0.0),
    "silu": jax.nn.silu,
}


def layernorm_kernel(x_ref, g_ref, b_ref, o_ref, *, eps, activation=None):
    """LayerNorm over the last dim of a (TB, D) row tile + fused epilogue."""
    y = _layernorm_f32(x_ref[...], g_ref[...], b_ref[...], eps)
    y = _EPILOGUES[activation](y)
    o_ref[...] = y.astype(o_ref.dtype)


def prenorm_linear_kernel(x_ref, g_ref, b_ref, w_ref, wb_ref, o_ref, *, eps, mxu_dtype):
    """Fused PreNorm + Linear fn:  LayerNorm(x) @ W + b   (f32 accumulation)."""
    y = _layernorm_f32(x_ref[...], g_ref[...], b_ref[...], eps)
    w = w_ref[...]
    if mxu_dtype is not None:                  # bf16 MXU operands, f32 accumulate
        y = y.astype(mxu_dtype)
        w = w.astype(mxu_dtype)
    out = jnp.dot(y, w, preferred_element_type=jnp.float32)
    out = out + wb_ref[...].astype(jnp.float32)
    o_ref[...] = out.astype(o_ref.dtype)


# --------------------------------------------------------------------------
# Tiling helpers
# --------------------------------------------------------------------------
def _round_up(n, m):
    return ((n + m - 1) // m) * m


def _sublane_pack(dtype):
    return max(8, 32 // jnp.dtype(dtype).itemsize)       # 8 f32, 16 bf16, 32 int8


def _row_tile(rows, dtype, max_tile=1024):
    pack = _sublane_pack(dtype)
    if rows <= pack:
        return rows                                       # single full block
    # Cap so the "parallel" row axis has >= 2 programs (v7x megacore), round to pack.
    half = _round_up(pl.cdiv(rows, 2), pack)
    return max(pack, min(_round_up(max_tile, pack), half))


def _n_tile(d_out, dim, w_itemsize, max_w_resident_bytes, n_tile):
    if d_out <= 256 or dim * d_out * w_itemsize <= max_w_resident_bytes:
        return d_out                                      # W fully VMEM-resident along N
    t = min(max(256, n_tile), d_out)
    return max(256, (t // 256) * 256)                     # multiple of 256 for 256-wide MXU


def _vmem_limit(estimate_bytes):
    # >= default scoped limits (16/32 MiB), <= v7x physical VMEM (64 MiB), with headroom.
    return int(min(64 * 2**20, max(32 * 2**20, 2 * estimate_bytes)))


def _const_spec(block_shape, index_map, *, single_buffer=True):
    """BlockSpec for an operand whose block index is constant across the grid.

    pl.Buffered(1) keeps a single VMEM buffer (default pipelining allocates 2
    even for constant blocks).  Falls back gracefully if unavailable.
    """
    if single_buffer:
        try:
            return pl.BlockSpec(block_shape, index_map, pipeline_mode=pl.Buffered(1))
        except Exception:                                  # older Pallas: no pipeline_mode
            pass
    return pl.BlockSpec(block_shape, index_map)


# --------------------------------------------------------------------------
# Wrapper:  PreNorm.forward
# --------------------------------------------------------------------------
def prenorm_forward(params, x, fn=None, *, eps=1e-5, row_tile=1024, n_tile=512,
                    max_w_resident_bytes=8 * 2**20, mxu_bf16=None, **kwargs):
    """fn(LayerNorm(x), **kwargs).

    * fn is None and params holds Linear weights ('w','b')  -> fused LN+matmul kernel.
    * fn is one of "gelu"/"relu"/"silu"                     -> fused LN+epilogue kernel.
    * fn is an arbitrary JAX callable                       -> Pallas LN, then fn in JAX.
    """
    dim = x.shape[-1]
    lead = x.shape[:-1]
    x2d = x.reshape(-1, dim)
    rows = x2d.shape[0]

    tile = _row_tile(rows, x.dtype, row_tile)
    grid_rows = pl.cdiv(rows, tile)            # no padding: boundary block masked on write

    gamma = params["gamma"].reshape(1, dim)
    beta = params["beta"].reshape(1, dim)
    x_bytes = jnp.dtype(x.dtype).itemsize

    # ---------------- fused PreNorm + Linear path ----------------
    if fn is None and "w" in params:
        w = params["w"]
        wb = params["b"].reshape(1, -1)
        d_out = w.shape[1]
        w_bytes = jnp.dtype(w.dtype).itemsize

        if mxu_bf16 is None:
            mxu_bf16 = (x.dtype == jnp.bfloat16) or (w.dtype == jnp.bfloat16)
        mxu_dtype = jnp.bfloat16 if mxu_bf16 else None

        tn = _n_tile(d_out, dim, w_bytes, max_w_resident_bytes, n_tile)
        grid_n = pl.cdiv(d_out, tn)
        w_resident = (grid_n == 1)

        vmem_est = (2 * tile * dim * x_bytes + 2 * tile * tn * x_bytes
                    + (1 if w_resident else 2) * dim * tn * w_bytes
                    + 4 * dim * 4 + 4 * tn * 4)
        cparams = pltpu.CompilerParams(
            dimension_semantics=("parallel", "parallel"),
            vmem_limit_bytes=_vmem_limit(vmem_est))
        cost = pl.CostEstimate(
            flops=2 * rows * dim * d_out + 8 * rows * dim,
            transcendentals=rows,
            bytes_accessed=rows * dim * x_bytes + dim * d_out * w_bytes
                           + rows * d_out * x_bytes)

        out = pl.pallas_call(
            partial(prenorm_linear_kernel, eps=eps, mxu_dtype=mxu_dtype),
            out_shape=jax.ShapeDtypeStruct((rows, d_out), x.dtype),
            grid=(grid_n, grid_rows),          # N outer -> W streamed once from HBM
            in_specs=[
                pl.BlockSpec((tile, dim), lambda j, i: (i, 0)),       # x rows (streamed)
                _const_spec((1, dim), lambda j, i: (0, 0)),           # gamma (1 buffer)
                _const_spec((1, dim), lambda j, i: (0, 0)),           # beta  (1 buffer)
                _const_spec((dim, tn), lambda j, i: (0, j),
                            single_buffer=w_resident),                # W
                _const_spec((1, tn), lambda j, i: (0, j),
                            single_buffer=w_resident),                # linear bias
            ],
            out_specs=pl.BlockSpec((tile, tn), lambda j, i: (i, j)),
            compiler_params=cparams,
            cost_estimate=cost,
        )(x2d, gamma, beta, w, wb)
        return out.reshape(*lead, d_out)

    # ---------------- generic path: LN (+ optional fused element-wise epilogue) ----------------
    activation, post_fn = None, None
    if isinstance(fn, str):
        if fn not in _EPILOGUES:
            raise ValueError(f"unknown activation epilogue: {fn!r}")
        activation = fn
    elif fn is not None:
        post_fn = fn

    vmem_est = 4 * tile * dim * x_bytes + 4 * dim * 4
    cparams = pltpu.CompilerParams(dimension_semantics=("parallel",),
                                   vmem_limit_bytes=_vmem_limit(vmem_est))
    normed = pl.pallas_call(
        partial(layernorm_kernel, eps=eps, activation=activation),
        out_shape=jax.ShapeDtypeStruct((rows, dim), x.dtype),
        grid=(grid_rows,),
        in_specs=[
            pl.BlockSpec((tile, dim), lambda i: (i, 0)),
            _const_spec((1, dim), lambda i: (0, 0)),
            _const_spec((1, dim), lambda i: (0, 0)),
        ],
        out_specs=pl.BlockSpec((tile, dim), lambda i: (i, 0)),
        compiler_params=cparams,
    )(x2d, gamma, beta)
    normed = normed.reshape(*lead, dim)
    # TODO(synk): an arbitrary `fn` nn.Module has no generic Pallas equivalent; only a
    # Linear fn (fused MXU matmul) and element-wise epilogues are fused into the kernel.
    return post_fn(normed, **kwargs) if post_fn is not None else normed


# --------------------------------------------------------------------------
# Pure-JAX reference (mirrors the torch forward, eval mode)
# --------------------------------------------------------------------------
def prenorm_reference(params, x, fn=None, *, eps=1e-5, **kwargs):
    mean = jnp.mean(x, axis=-1, keepdims=True)
    var = jnp.mean((x - mean) ** 2, axis=-1, keepdims=True)
    y = (x - mean) * jax.lax.rsqrt(var + eps) * params["gamma"] + params["beta"]
    if fn is None and "w" in params:
        return y @ params["w"] + params["b"]
    return fn(y, **kwargs) if fn is not None else y


def init_params(key, dim, d_out=None):
    k = jax.random.split(key, 4)
    params = {
        "gamma": 1.0 + 0.1 * jax.random.normal(k[0], (dim,), jnp.float32),
        "beta": 0.05 * jax.random.normal(k[1], (dim,), jnp.float32),
    }
    if d_out is not None:
        limit = jnp.sqrt(6.0 / (dim + d_out))
        params["w"] = jax.random.uniform(k[2], (dim, d_out), jnp.float32, -limit, limit)
        params["b"] = 0.1 * jax.random.normal(k[3], (d_out,), jnp.float32)
    return params


# --------------------------------------------------------------------------
if __name__ == "__main__":
    key = jax.random.PRNGKey(0)
    kp, kp2, kx = jax.random.split(key, 3)

    B, S, D, D_OUT = 2, 12, 128, 128          # rows = 24 -> tile 16, partial last block
    params = init_params(kp, D, D_OUT)
    x = jax.random.normal(kx, (B, S, D), jnp.float32)

    # 1) fused PreNorm + Linear, f32 MXU path, W fully resident (grid_n == 1)
    out1 = jax.block_until_ready(prenorm_forward(params, x))
    ref1 = prenorm_reference(params, x)
    assert out1.shape == (B, S, D_OUT)
    assert jnp.allclose(out1, ref1, atol=1e-3, rtol=1e-3), "fused f32 mismatch"

    # 2) fused path with a tiled d_out (exercises the N grid axis / streamed W)
    params_big = init_params(kp2, D, 512)
    out2 = jax.block_until_ready(
        prenorm_forward(params_big, x, n_tile=256, max_w_resident_bytes=0))
    ref2 = prenorm_reference(params_big, x)
    assert out2.shape == (B, S, 512)
    assert jnp.allclose(out2, ref2, atol=1e-3, rtol=1e-3), "fused N-tiled mismatch"

    # 3) fused path with bf16 input -> bf16 MXU operands (f32 LN stats + accumulation)
    xb = x.astype(jnp.bfloat16)
    out3 = jax.block_until_ready(prenorm_forward(params, xb))
    ref3 = prenorm_reference(params, xb.astype(jnp.float32))
    assert out3.dtype == jnp.bfloat16
    assert jnp.allclose(out3.astype(jnp.float32), ref3, atol=5e-2, rtol=5e-2), "bf16 mismatch"

    # 4) generic path with a fused GELU epilogue (no extra HBM round trip)
    norm_only = {"gamma": params["gamma"], "beta": params["beta"]}
    out4 = jax.block_until_ready(prenorm_forward(norm_only, x, fn="gelu"))
    ref4 = prenorm_reference(norm_only, x, fn=jax.nn.gelu)
    assert jnp.allclose(out4, ref4, atol=1e-4, rtol=1e-4), "gelu epilogue mismatch"

    # 5) generic path with an arbitrary callable fn (+ kwargs), applied as a JAX post-op
    my_fn = lambda z, scale=1.0: jnp.tanh(z) * scale
    out5 = jax.block_until_ready(prenorm_forward(norm_only, x, fn=my_fn, scale=0.5))
    ref5 = prenorm_reference(norm_only, x, fn=my_fn, scale=0.5)
    assert jnp.allclose(out5, ref5, atol=1e-4, rtol=1e-4), "callable fn mismatch"

    print("KERNEL_OK")
</pallas_src>

<mosaic_0001>
module attributes {stable_mosaic.version = 11 : i64} {
  func.func @prenorm_linear_kernel(%arg0: i32, %arg1: i32, %arg2: memref<16x128xf32, #tpu.memory_space<vmem>>, %arg3: memref<1x128xf32, #tpu.memory_space<vmem>>, %arg4: memref<1x128xf32, #tpu.memory_space<vmem>>, %arg5: memref<128x128xf32, #tpu.memory_space<vmem>>, %arg6: memref<1x128xf32, #tpu.memory_space<vmem>>, %arg7: memref<16x128xf32, #tpu.memory_space<vmem>>) attributes {dimension_semantics = [#tpu.dimension_semantics<parallel>, #tpu.dimension_semantics<parallel>], iteration_bounds = array<i64: 1, 2>, scalar_prefetch = 0 : i64, scratch_operands = 0 : i64, tpu.core_type = #tpu.core_type<tc>, window_params = [{transform_indices = @transform_0, window_bounds = array<i64: 16, 128>}, {pipeline_mode = #tpu.pipeline_mode<synchronous>, transform_indices = @transform_1, window_bounds = array<i64: 1, 128>}, {pipeline_mode = #tpu.pipeline_mode<synchronous>, transform_indices = @transform_2, window_bounds = array<i64: 1, 128>}, {pipeline_mode = #tpu.pipeline_mode<synchronous>, transform_indices = @transform_3, window_bounds = array<i64: 128, 128>}, {pipeline_mode = #tpu.pipeline_mode<synchronous>, transform_indices = @transform_4, window_bounds = array<i64: 1, 128>}, {transform_indices = @transform_5, window_bounds = array<i64: 16, 128>}]} {
    %c0 = arith.constant 0 : index
    %c0_0 = arith.constant 0 : index
    %0 = vector.load %arg2[%c0, %c0_0] : memref<16x128xf32, #tpu.memory_space<vmem>>, vector<16x128xf32>
    %c0_1 = arith.constant 0 : index
    %c0_2 = arith.constant 0 : index
    %1 = vector.load %arg3[%c0_1, %c0_2] : memref<1x128xf32, #tpu.memory_space<vmem>>, vector<1x128xf32>
    %c0_3 = arith.constant 0 : index
    %c0_4 = arith.constant 0 : index
    %2 = vector.load %arg4[%c0_3, %c0_4] : memref<1x128xf32, #tpu.memory_space<vmem>>, vector<1x128xf32>
    %cst = arith.constant dense<0.000000e+00> : vector<16xf32>
    %3 = vector.multi_reduction <add>, %0, %cst [1] : vector<16x128xf32> to vector<16xf32>
    %4 = vector.shape_cast %3 : vector<16xf32> to vector<16x1xf32>
    %cst_5 = arith.constant 1.280000e+02 : f32
    %5 = vector.broadcast %cst_5 : f32 to vector<16x1xf32>
    %6 = arith.divf %4, %5 : vector<16x1xf32>
    %7 = vector.broadcast %6 : vector<16x1xf32> to vector<16x128xf32>
    %8 = arith.subf %0, %7 : vector<16x128xf32>
    %9 = arith.mulf %8, %8 : vector<16x128xf32>
    %cst_6 = arith.constant dense<0.000000e+00> : vector<16xf32>
    %10 = vector.multi_reduction <add>, %9, %cst_6 [1] : vector<16x128xf32> to vector<16xf32>
    %11 = vector.shape_cast %10 : vector<16xf32> to vector<16x1xf32>
    %cst_7 = arith.constant 1.280000e+02 : f32
    %12 = vector.broadcast %cst_7 : f32 to vector<16x1xf32>
    %13 = arith.divf %11, %12 : vector<16x1xf32>
    %cst_8 = arith.constant 9.99999974E-6 : f32
    %14 = vector.broadcast %cst_8 : f32 to vector<16x1xf32>
    %15 = arith.addf %13, %14 : vector<16x1xf32>
    %16 = math.rsqrt %15 : vector<16x1xf32>
    %17 = vector.broadcast %16 : vector<16x1xf32> to vector<16x128xf32>
    %18 = arith.mulf %8, %17 : vector<16x128xf32>
    %19 = vector.broadcast %1 : vector<1x128xf32> to vector<16x128xf32>
    %20 = arith.mulf %18, %19 : vector<16x128xf32>
    %21 = vector.broadcast %2 : vector<1x128xf32> to vector<16x128xf32>
    %22 = arith.addf %20, %21 : vector<16x128xf32>
    %c0_9 = arith.constant 0 : index
    %c0_10 = arith.constant 0 : index
    %23 = vector.load %arg5[%c0_9, %c0_10] : memref<128x128xf32, #tpu.memory_space<vmem>>, vector<128x128xf32>
    %cst_11 = arith.constant dense<0.000000e+00> : vector<16x128xf32>
    %24 = tpu.matmul %22, %23, %cst_11 {dimension_numbers = #tpu.dot_dimension_numbers<[1], [0], [0], [1], [0, 0, 1, 1], [], []>} : vector<16x128xf32>, vector<128x128xf32>, vector<16x128xf32> -> vector<16x128xf32>
    %c0_12 = arith.constant 0 : index
    %c0_13 = arith.constant 0 : index
    %25 = vector.load %arg6[%c0_12, %c0_13] : memref<1x128xf32, #tpu.memory_space<vmem>>, vector<1x128xf32>
    %26 = vector.broadcast %25 : vector<1x128xf32> to vector<16x128xf32>
    %27 = arith.addf %24, %26 : vector<16x128xf32>
    %c0_14 = arith.constant 0 : index
    %c0_15 = arith.constant 0 : index
    %28 = vector.load %arg7[%c0_14, %c0_15] : memref<16x128xf32, #tpu.memory_space<vmem>>, vector<16x128xf32>
    tpu.vector_store %arg7[%c0_14, %c0_15], %27 {strides = array<i32>} : memref<16x128xf32, #tpu.memory_space<vmem>>, vector<16x128xf32>,
    return
  }
  func.func @transform_0(%arg0: i32, %arg1: i32) -> (i32, i32) {
    %c0_i32 = arith.constant 0 : i32
    %c0_i32_0 = arith.constant 0 : i32
    return %arg1, %c0_i32 : i32, i32
  }
  func.func @transform_1(%arg0: i32, %arg1: i32) -> (i32, i32) {
    %c0_i32 = arith.constant 0 : i32
    %c0_i32_0 = arith.constant 0 : i32
    %c0_i32_1 = arith.constant 0 : i32
    return %c0_i32, %c0_i32_0 : i32, i32
  }
  func.func @transform_2(%arg0: i32, %arg1: i32) -> (i32, i32) {
    %c0_i32 = arith.constant 0 : i32
    %c0_i32_0 = arith.constant 0 : i32
    %c0_i32_1 = arith.constant 0 : i32
    return %c0_i32, %c0_i32_0 : i32, i32
  }
  func.func @transform_3(%arg0: i32, %arg1: i32) -> (i32, i32) {
    %c0_i32 = arith.constant 0 : i32
    %c0_i32_0 = arith.constant 0 : i32
    return %c0_i32, %arg0 : i32, i32
  }
  func.func @transform_4(%arg0: i32, %arg1: i32) -> (i32, i32) {
    %c0_i32 = arith.constant 0 : i32
    %c0_i32_0 = arith.constant 0 : i32
    return %c0_i32, %arg0 : i32, i32
  }
  func.func @transform_5(%arg0: i32, %arg1: i32) -> (i32, i32) {
    %c0_i32 = arith.constant 0 : i32
    return %arg1, %arg0 : i32, i32
  }
}

</mosaic_0001>

<bundles_post_ra>
// kernel: tpu_custom_call.1
= control target key start
LH: loop header
LB: loop body
LE: loop exit
PB: predicated region body
PF: predicated region fallthrough
CT: control target
= control target key end

     0   :  { %10 = vsyncpa [#allocation3], 0  ;;  %s1134_s0 = inlined_call_operand.hbm [shape: f32[24,128], index: 0, kind: input, shape index: {}]   ;;  %s1135_s1 = inlined_call_operand.vmem [shape: f32[1,128], index: 1, kind: input, shape index: {}]   ;;  %s1136_s2 = inlined_call_operand.vmem [shape: f32[1,128], index: 2, kind: input, shape index: {}]   ;;  %s1137_s3 = inlined_call_operand.hbm [shape: f32[128,128], index: 3, kind: input, shape index: {}]   ;;  %s1138_s4 = inlined_call_operand.vmem [shape: f32[1,128], index: 4, kind: input, shape index: {}]   ;;  %s1139_s5 = inlined_call_operand.hbm [shape: f32[24,128], index: 5, kind: output, shape index: {}]  }
   0x1   :  { %12 = vsyncpa [#allocation3 + $0x1], 0 }
   0x2   :  { %13 = vsyncpa [#allocation6], 0 }
   0x3   :  { %14 = vsyncpa [#allocation4], 0 }
   0x4   :  { %16 = vsyncpa [#allocation4 + $0x1], 0  ;;  %s917_s18 = smov 0   ;;  %s919_s19 = smov 0  }
   0x5   :  { %s921_s20 = smov 0   ;;  %s923_s21 = smov 0  }
   0x6   :  { %s925_s22 = smov 0   ;;  %s927_s23 = smov 0  }
   0x7 LB: > { %s580_s24 = sadd.s32 4294967295, %s876_s23   ;;  %s581_s25 = sadd.s32 4294967294, %s876_s23   ;;  %s876_s23 = sphi %s927_s23, %s22_s23   ;;  %s872_s22 = sphi %s925_s22, %s1154_s22   ;;  %s868_s21 = sphi %s923_s21, %s1153_s21   ;;  %s864_s20 = sphi %s921_s20, %s1152_s20   ;;  %s860_s19 = sphi %s919_s19, %s1151_s19   ;;  %s856_s18 = sphi %s917_s18, %s1150_s18  }
   0x8   : > { %s31_s26 = sadd.s32 1, %s872_s22  ;;  %s41_s27 = sadd.s32 1, %s864_s20 }
   0x9   : > { %p32_p0 = scmp.ge.s32.totalorder %s31_s26, 2  ;;  %p48_p1 = scmp.ne.s32.totalorder %s864_s20, %s860_s19 }
   0xa   : > { %p49_p2 = scmp.eq.s32.totalorder %s876_s23, 0  ;;  %p54_p3 = scmp.ne.s32.totalorder %s860_s19, %s856_s18 }
   0xb   : > { %s1156_s26 = smov (%p32_p0, %s31_s26), 0  ;;  %p962_p5 = scmp.eq.s32.totalorder %s580_s24, 0 }
   0xc   : > { %p958_p4 = por %p49_p2, %p48_p1  ;;  %s38_s30 = ssub.s32 %s872_s22, %s1156_s26 }
   0xd   : > { %p174_p6 = scmp.eq.s32.totalorder %s580_s24, 1  ;;  %p39_p7 = scmp.eq.s32.totalorder %s38_s30, 0 }
   0xe   : > { %p970_p8 = por %p962_p5, %p54_p3  ;;  %p180_p10 = scmp.eq.s32.totalorder %s581_s25, 1 }
   0xf   : > { %p974_p9 = por %p174_p6, %p48_p1  ;;  %p582_p12 = scmp.ge.s32.totalorder %s876_s23, 1 }
  0x10   : > { %s1143_s6 = scalar_select %p970_p8, 1, 0 }
  0x11   : > { %s1144_s7 = scalar_select %p974_p9, 1, 0 }
  0x12   : > { %s979_s8 = scalar_select %p39_p7, %s864_s20, %s41_s27  }
  0x13   : > { %p981_p11 = por %p180_p10, %p54_p3  ;;  %p187_p13 = scmp.lt.s32.totalorder %s876_s23, 3 }
  0x14   : > { %s878_s11 = smov [#allocation5]  }
  0x15   : > { %s1145_s9 = scalar_select %p981_p11, 1, 0 }
  0x16   : > { %p987_p0 = pnand %p582_p12, %p187_p13  ;;  %s207_s12 = sshll.u32 %s878_s11, 4  ;;  %s208_s12 = int_to_ptr.vmem [resolvable:$true] %s207_s12 }
  0x17   : > { %s751_s13 = scalar_lea.vmem %s208_s12, 2048  ;;  %p759_p11 = scmp.lt.s32.totalorder %s208_s12, %s208_s12 }
  0x18   : > { %p670_p1 = pneg %p987_p0  ;;  %p752_p3 = scmp.ne.s32.totalorder %s208_s12, %s751_s13 }
  0x19   : > { %p760_p9 = scmp.lt.s32.totalorder %s751_s13, %s751_s13 }
  0x1a   : > { %p671_p2 = pnand %p670_p1, %p962_p5 }
  0x1b   : > { %p761_p8 = por %p760_p9, %p759_p11 }
  0x1c   : > { %p742_p6 = pneg %p671_p2 }
  0x1e   : > { %p754_p7 = pnand %p752_p3, %p742_p6 }
  0x20   : > { %p755_p10 = pneg %p754_p7 }
  0x22   : > { %p762_p12 = pnand %p761_p8, %p755_p10 }
  0x24   : > { %765 = shalt.err (!%p762_p12)
}
  0x25   : > { %s879_s14 = smov 128   ;;  %s880_s15 = smov 8  }
  0x26   : > { %673 = dma.hbm_to_vmem [thread:$0]  (!%p671_p2), %s1137_s3, 2048, %s208_s12, [#allocation6], %s879_s14, %s879_s14, %s880_s15  }
  0x27   : > { %p585_p13 = scmp.ge.s32.totalorder %s876_s23, 2 }
  0x29   : > { %223 = sbr.rel (%p585_p13) target bundleno = 78 (0x4e), region = 32 }
  0x2e   : > { %226 = sbr.rel (!%p958_p4) target bundleno = 78 (0x4e), region = 36  ;;  %s227_s24 = sand.u32 (%p958_p4), 1, %s864_s20  }
  0x2f   : > { %s587_s25 = sshll.u32 (%p958_p4), %s872_s22, 1  ;;  %s586_s27 = sshll.u32 (%p958_p4), %s227_s24, 4 }
  0x30   : > { %s233_s30 = ssub.s32 (%p958_p4), 3, %s587_s25  ;;  %s1008_s13 = scalar_lea.sflag (%p958_p4), [#allocation3], %s227_s24 }
  0x31   : > { %p234_p8 = scmp.lt.s32.totalorder (%p958_p4), %s233_s30, 2  ;;  %s231_s14 = scalar_lea.vmem (%p958_p4), [#allocation2], %s586_s27 }
  0x33   : > { %s1158_s30 = smov (!%p234_p8, %s233_s30), 2 }
  0x34   : > { %s1005_s11 = sshll.u32 %s1158_s30, 7 }
  0x35   : > { %s238_s12 = ssub.s32 256, %s1005_s11 }
  0x36   : > { %239 = vsyncadd %s1008_s13, %s238_s12  ;;  %p589_p4 = scmp.ne.s32.totalorder %s1005_s11, 0  ;;  %s609_s28 = sshll.u32 %s872_s22, 8 }
  0x37   : > { %s1016_s17 = scalar_lea.hbm %s1134_s0, %s609_s28  ;;  %s244_s25 = sshll.u32 %s231_s14, 4  ;;  %s1018_s25 = int_to_ptr.vmem [resolvable:$true] %s244_s25 }
  0x38   : > { %s766_s24 = scalar_lea.hbm %s1016_s17, %s1005_s11  ;;  %s770_s12 = scalar_lea.hbm %s1134_s0, 384 }
  0x39   : > { %p767_p9 = scmp.ne.s32.totalorder %s1016_s17, %s766_s24  ;;  %p772_p2 = scmp.lt.s32.totalorder %s770_s12, %s766_s24 }
  0x3b   : > { %p768_p11 = pnand %p767_p9, %p589_p4 }
  0x3d   : > { %p769_p1 = pneg %p768_p11 }
  0x3f   : > { %p774_p6 = pnand %p772_p2, %p769_p1 }
  0x41   : > { %777 = shalt.err (!%p774_p6)
}
  0x42   : > { %s778_s14 = scalar_lea.vmem %s1018_s25, %s1005_s11  ;;  %s881_s28 = smov [#allocation2]  }
  0x43   : > { %p779_p3 = scmp.ne.s32.totalorder %s1018_s25, %s778_s14  ;;  %s782_s15 = sshll.u32 %s881_s28, 4  ;;  %s783_s15 = int_to_ptr.vmem [resolvable:$false] %s782_s15 }
  0x44   : > { %s784_s16 = scalar_lea.vmem %s783_s15, 512  ;;  %p785_p12 = scmp.lt.s32.totalorder %s1018_s25, %s783_s15 }
  0x45   : > { %p780_p7 = pnand %p779_p3, %p589_p4  ;;  %p786_p8 = scmp.lt.s32.totalorder %s784_s16, %s778_s14 }
  0x47   : > { %p781_p10 = pneg %p780_p7  ;;  %p787_p9 = por %p786_p8, %p785_p12 }
  0x49   : > { %p788_p11 = pnand %p787_p9, %p781_p10 }
  0x4b   : > { %791 = shalt.err (!%p788_p11)
}
  0x4c   : > { %s882_s24 = smov 128   ;;  %s883_s27 = smov 8  }
  0x4d   : > { %250 = dma.hbm_to_vmem [thread:$0]  (%p589_p4), %s1016_s17, %s1005_s11, %s1018_s25, %s1008_s13, %s882_s24, %s882_s24, %s883_s27  }
  0x4e PF: > { %256 = sbr.rel (%p987_p0) target bundleno = 622 (0x26e), region = 40  ;;  %s1043_s30 = sand.u32 (!%p987_p0), 1, %s860_s19  }
  0x4f   : > { %s594_s12 = sshll.u32 (!%p987_p0), %s1043_s30, 4  ;;  %s259_s14 = scalar_lea.sflag (!%p987_p0), [#allocation3], %s1043_s30 }
  0x50   : > { %s262_s28 = scalar_lea.vmem (!%p987_p0), [#allocation2], %s594_s12  ;;  %p1147_p1 = scmp.ne.s32.totalorder (!%p987_p0), %s1143_s6, 0 }
  0x53   : > { %843 = dma.done.wait (%p1147_p1), %s259_s14, 256  }
  0x54   : > { %845 = vsyncadd (%p1147_p1), %s259_s14, 4294967040 }
  0x55   : > { %847 = dma.done.wait (%p962_p5), [#allocation6], 2048  }
  0x56   : > { %849 = vsyncadd (%p962_p5), [#allocation6], 4294965248  ;;  %v309_v0 = vld [vmem:[%s262_s28] sm:$0xff]  ;;  %v310_v1 = vld [vmem:[%s262_s28 + $0x8] sm:$0xff]  ;;  %s295_s25 = scalar_lea.vmem [#allocation7], %s594_s12  ;;  %s453_s15 = scalar_lea.sflag [#allocation4], %s1043_s30 }
  0x57   : > { %313 = vadd.xlane.f32.xlu0 %v309_v0  ;;  %v367_v2 = vld [vmem:[#allocation5 + $0x78] sm:$0xff]  ;;  %v366_v3 = vld [vmem:[#allocation5 + $0x70] sm:$0xff]  ;;  %v365_v12 = vld [vmem:[#allocation5 + $0x68] sm:$0xff]  ;;  %p1148_p5 = scmp.ne.s32.totalorder %s1144_s7, 0 }
  0x58   : > { %629 = vmatprep.subr.mxu0 %v367_v2  ;;  %v364_v13 = vld [vmem:[#allocation5 + $0x60] sm:$0xff]  ;;  %v363_v14 = vld [vmem:[#allocation5 + $0x58] sm:$0xff]  ;;  %v362_v15 = vld [vmem:[#allocation5 + $0x50] sm:$0xff]  ;;  %s601_s16 = sshll.u32 (%p1148_p5), %s868_s21, 1 }
  0x59   : > { %630 = vmatpush3.msra.mxu0 %v367_v2  ;;  %v361_v16 = vld [vmem:[#allocation5 + $0x48] sm:$0xff]  ;;  %v360_v17 = vld [vmem:[#allocation5 + $0x40] sm:$0xff]  ;;  %v359_v18 = vld [vmem:[#allocation5 + $0x38] sm:$0xff]  ;;  %s461_s24 = ssub.s32 (%p1148_p5), 3, %s601_s16 }
  0x5a   : > { %631 = vmatprep.subr.mxu0 %v366_v3  ;;  %v358_v19 = vld [vmem:[#allocation5 + $0x30] sm:$0xff]  ;;  %v357_v20 = vld [vmem:[#allocation5 + $0x28] sm:$0xff]  ;;  %v356_v21 = vld [vmem:[#allocation5 + $0x20] sm:$0xff]  ;;  %p462_p0 = scmp.lt.s32.totalorder (%p1148_p5), %s461_s24, 2 }
  0x5b   : > { %315 = vadd.xlane.f32.xlu0 %v310_v1  ;;  %632 = vmatpush3.msra.mxu0 %v366_v3  ;;  %v355_v22 = vld [vmem:[#allocation5 + $0x18] sm:$0xff]  ;;  %v354_v23 = vld [vmem:[#allocation5 + $0x10] sm:$0xff]  ;;  %v353_v24 = vld [vmem:[#allocation5 + $0x8] sm:$0xff] }
  0x5c   : > { %633 = vmatprep.subr.mxu0 %v365_v12  ;;  %v352_v25 = vld [vmem:[#allocation5] sm:$0xff] }
  0x5d   : > { %634 = vmatpush3.msra.mxu0 %v365_v12  ;;  %v597_v33 = vld [vmem:[%s1135_s1] ss:$0 sm:$0xff] }
  0x5e   : > { %635 = vmatprep.subr.mxu0 %v364_v13  ;;  %v598_v35 = vld [vmem:[%s1136_s2] ss:$0 sm:$0xff] }
  0x5f   : > { %636 = vmatpush3.msra.mxu0 %v364_v13  ;;  %v599_v42 = vld [vmem:[%s1138_s4] ss:$0 sm:$0xff] }
  0x60   : > { %637 = vmatprep.subr.mxu0 %v363_v14 }
  0x61   : > { %638 = vmatpush3.msra.mxu0 %v363_v14 }
  0x62   : > { %639 = vmatprep.subr.mxu0 %v362_v15 }
  0x63   : > { %640 = vmatpush3.msra.mxu0 %v362_v15 }
  0x64   : > { %641 = vmatprep.subr.mxu0 %v361_v16 }
  0x65   : > { %642 = vmatpush3.msra.mxu0 %v361_v16 }
  0x66   : > { %643 = vmatprep.subr.mxu0 %v360_v17 }
  0x67   : > { %644 = vmatpush3.msra.mxu0 %v360_v17 }
  0x68   : > { %645 = vmatprep.subr.mxu0 %v359_v18 }
  0x69   : > { %646 = vmatpush3.msra.mxu0 %v359_v18 }
  0x6a   : > { %647 = vmatprep.subr.mxu0 %v358_v19 }
  0x6b   : > { %648 = vmatpush3.msra.mxu0 %v358_v19 }
  0x6c   : > { %649 = vmatprep.subr.mxu0 %v357_v20 }
  0x6d   : > { %650 = vmatpush3.msra.mxu0 %v357_v20 }
  0x6e   : > { %651 = vmatprep.subr.mxu0 %v356_v21 }
  0x6f   : > { %652 = vmatpush3.msra.mxu0 %v356_v21 }
  0x70   : > { %653 = vmatprep.subr.mxu0 %v355_v22 }
  0x71   : > { %654 = vmatpush3.msra.mxu0 %v355_v22 }
  0x72   : > { %655 = vmatprep.subr.mxu0 %v354_v23 }
  0x73   : > { %656 = vmatpush3.msra.mxu0 %v354_v23 }
  0x74   : > { %657 = vmatprep.subr.mxu0 %v353_v24 }
  0x75   : > { %658 = vmatpush3.msra.mxu0 %v353_v24 }
  0x76   : > { %659 = vmatprep.subr.mxu0 %v352_v25 }
  0x77   : > { %660 = vmatpush3.msra.mxu0 %v352_v25 }
  0xe0   : > { %v314_v4 = vpop.xlane.xlu0 %313 }
  0xe1   : > { %v318_v5 = vmul.f32 0.0078125, %v314_v4 }
  0xe3   : > { %v320_v6 = vsub.f32 %v309_v0, %v318_v5 }
  0xe4   : > { %v316_v7 = vpop.xlane.xlu0 %315 }
  0xe5   : > { %v319_v8 = vmul.f32 0.0078125, %v316_v7  ;;  %v322_v9 = vmul.f32 %v320_v6, %v320_v6 }
  0xe7   : > { %v321_v10 = vsub.f32 %v310_v1, %v319_v8  ;;  %324 = vadd.xlane.f32.xlu1 %v322_v9 }
  0xe9   : > { %v323_v11 = vmul.f32 %v321_v10, %v321_v10 }
  0xeb   : > { %326 = vadd.xlane.f32.xlu1 %v323_v11 }
 0x170   : > { %v325_v26 = vpop.xlane.xlu1 %324 }
 0x171   : > { %v328_v27 = vmul.f32 0.0078125, %v325_v26 }
 0x173   : > { %v330_v28 = vadd.f32 1e-05, %v328_v27 }
 0x174   : > { %v327_v29 = vpop.xlane.xlu1 %326 }
 0x175   : > { %736 = vrsqrt.f32 %v330_v28  ;;  %v329_v30 = vmul.f32 0.0078125, %v327_v29 }
 0x177   : > { %v331_v31 = vadd.f32 1e-05, %v329_v30 }
 0x179   : > { %738 = vrsqrt.f32 %v331_v31 }
 0x182   : > { %v737_v32 = vpop.eup %736 }
 0x183   : > { %v334_v34 = vmul.f32 %v737_v32, %v320_v6 }
 0x185   : > { %v342_v36 = vmul.f32 %v597_v33, %v334_v34 }
 0x186   : > { %v739_v37 = vpop.eup %738 }
 0x187   : > { %v335_v38 = vmul.f32 %v739_v37, %v321_v10  ;;  %v350_v39 = vadd.f32 %v598_v35, %v342_v36 }
 0x189   : > { %v343_v40 = vmul.f32 %v597_v33, %v335_v38  ;;  %661 = vmatprep.mubr.f32.mxu0 %v350_v39 }
 0x18b   : > { %v351_v41 = vadd.f32 %v598_v35, %v343_v40 }
 0x18d   : > { %662 = vmatmul.mubr.f32.vlgmr.msra.gmra.mxu0 %v351_v41 }
 0x24d   : > { %v663_v43 = vpop.f32.mrf.mxu0 }
 0x24e   : > { %v447_v44 = vadd.f32 %v663_v43, %v599_v42  ;;  %459 = sbr.rel (!%p1148_p5) target bundleno = 622 (0x26e), region = 52 }
 0x24f   : > { %v441_v45 = vpop.f32.mrf.mxu0 }
 0x250   : > { %451 = vst [vmem:[%s295_s25 + $0x8] sm:$0xff] %v447_v44  ;;  %v442_v46 = vadd.f32 %v599_v42, %v441_v45 }
 0x252   : > { %450 = vst [vmem:[%s295_s25] sm:$0xff] %v442_v46 }
 0x253   : > { %s1160_s24 = smov (!%p462_p0, %s461_s24), 2 }
 0x254   : > { %s1072_s27 = sshll.u32 %s1160_s24, 7 }
 0x255   : > { %s466_s14 = ssub.s32 256, %s1072_s27 }
 0x256   : > { %467 = vsyncadd %s453_s15, %s466_s14  ;;  %p603_p4 = scmp.ne.s32.totalorder %s1072_s27, 0  ;;  %s610_s12 = sshll.u32 %s868_s21, 8 }
 0x257   : > { %s1082_s29 = scalar_lea.hbm %s1139_s5, %s610_s12  ;;  %s473_s6 = sshll.u32 %s295_s25, 4  ;;  %s1084_s6 = int_to_ptr.vmem [resolvable:$true] %s473_s6 }
 0x258   : > { %s792_s10 = scalar_lea.vmem %s1084_s6, %s1072_s27  ;;  %s884_s11 = smov [#allocation7]  }
 0x259   : > { %p793_p2 = scmp.ne.s32.totalorder %s1084_s6, %s792_s10  ;;  %s796_s13 = sshll.u32 %s884_s11, 4  ;;  %s797_s13 = int_to_ptr.vmem [resolvable:$false] %s796_s13 }
 0x25a   : > { %s798_s21 = scalar_lea.vmem %s797_s13, 512  ;;  %p799_p7 = scmp.lt.s32.totalorder %s1084_s6, %s797_s13 }
 0x25b   : > { %p794_p6 = pnand %p793_p2, %p603_p4  ;;  %p800_p10 = scmp.lt.s32.totalorder %s798_s21, %s792_s10 }
 0x25d   : > { %p795_p3 = pneg %p794_p6  ;;  %p801_p12 = por %p800_p10, %p799_p7 }
 0x25f   : > { %p802_p8 = pnand %p801_p12, %p795_p3 }
 0x261   : > { %805 = shalt.err (!%p802_p8)
}
 0x262   : > { %s806_s17 = scalar_lea.hbm %s1082_s29, %s1072_s27  ;;  %s810_s24 = scalar_lea.hbm %s1139_s5, 384 }
 0x263   : > { %p807_p9 = scmp.ne.s32.totalorder %s1082_s29, %s806_s17  ;;  %p811_p5 = scmp.lt.s32.totalorder %s1082_s29, %s1139_s5 }
 0x264   : > { %p812_p0 = scmp.lt.s32.totalorder %s810_s24, %s806_s17 }
 0x265   : > { %p808_p11 = pnand %p807_p9, %p603_p4 }
 0x266   : > { %p813_p2 = por %p812_p0, %p811_p5 }
 0x267   : > { %p809_p1 = pneg %p808_p11 }
 0x269   : > { %p814_p6 = pnand %p813_p2, %p809_p1 }
 0x26b   : > { %817 = shalt.err (!%p814_p6)
}
 0x26c   : > { %s885_s7 = smov 128   ;;  %s886_s28 = smov 8  }
 0x26d   : > { %479 = dma.vmem_to_hbm [thread:$0]  (%p603_p4), %s1084_s6, %s1072_s27, %s1082_s29, %s453_s15, %s885_s7, %s885_s7, %s886_s28  }
 0x26e PF: > { %s488_s10 = sand.u32 1, %s856_s18   ;;  %p1149_p3 = scmp.ne.s32.totalorder %s1145_s9, 0 }
 0x26f   : > { %s489_s11 = scalar_lea.sflag [#allocation4], %s488_s10 }
 0x270   : > { %p675_p7 = pnand %p585_p13, %p1149_p3 }
 0x272   : > { %p676_p10 = pneg %p675_p7 }
 0x274   : > { %851 = dma.done.wait (%p676_p10), %s489_s11, 256  }
 0x275   : > { %853 = vsyncadd (%p676_p10), %s489_s11, 4294967040  ;;  %s22_s23 = sadd.s32 1, %s876_s23   ;;  %s1150_s18 = smov %s860_s19 }
 0x276   : > { %p19_p12 = scmp.ge.s32.totalorder %s22_s23, 4   ;;  %s1151_s19 = smov %s864_s20 }
 0x277   : > { %s1152_s20 = smov %s979_s8  ;;  %s1153_s21 = smov %s872_s22 }
 0x278   : > { %s1154_s22 = smov %s1156_s26  ;;  %21 = sbr.rel (!%p19_p12) target bundleno = 7 (0x7), region = 93 }
 0x27d   :  { %494 = vsyncpa [#allocation3], 1 }
 0x27e   :  { %496 = vsyncpa [#allocation3 + $0x1], 1 }
 0x27f   :  { %497 = vsyncpa [#allocation6], 1 }
 0x280   :  { %498 = vsyncpa [#allocation4], 1 }
 0x281   :  { %500 = vsyncpa [#allocation4 + $0x1], 1 }

</bundles_post_ra>
